<compile_context>
chip_gen: v7x
topology: tpu7x:2x2x1
jax: 0.10.0
libtpu: 0.0.40
codegen_flags: <defaults>
</compile_context>

<pallas_src>
import functools

import jax
import jax.numpy as jnp
from jax.experimental import pallas as pl
from jax.experimental.pallas import tpu as pltpu


def _round_up(v, m):
    return ((v + m - 1) // m) * m


def _cdiv(a, b):
    return -(-a // b)


def _logreg_kernel(x_ref, w_ref, b_ref, o_ref, *, fold):
    # x_ref: (TR, Df) VMEM   -- Df = fold * D; each row packs `fold` batch rows
    # w_ref: (fold, Df) VMEM -- row j holds W in lanes [j*D, (j+1)*D), 0 elsewhere
    # b_ref: (1, 1)   SMEM   -- scalar bias
    # o_ref: (fold, TR) VMEM -- o_ref[j, r] = sigmoid(x_orig[r*fold + j] . W + b)
    x = x_ref[...]
    bias = b_ref[0, 0]
    for j in range(fold):  # static unroll; fold <= 16
        wj = w_ref[pl.ds(j, 1), :]                        # (1, Df), segment-masked
        logits = jnp.sum(x * wj, axis=-1) + bias          # (TR,)  VPU mul + lane reduce
        o_ref[pl.ds(j, 1), :] = (
            jax.nn.sigmoid(logits).reshape(1, -1).astype(o_ref.dtype))


def _vmem_capacity_bytes():
    try:
        return int(pltpu.get_tpu_info().vmem_capacity_bytes)
    except Exception:
        return 64 * 1024 * 1024  # conservative (v7x-sized) if query unavailable


def _choose_tile_rows(b_f, df, vmem_cap):
    """Folded rows per tile, sized by bytes against the lane-padded footprint."""
    if vmem_cap <= 64 * 1024 * 1024:          # v7x-class: 64 MiB physical VMEM
        per_buffer_bytes = 6 * 1024 * 1024
    else:                                      # v5e / v6e: 128 MiB physical VMEM
        per_buffer_bytes = 8 * 1024 * 1024
    row_bytes = 4 * max(df, 128)               # lane-padded f32 footprint per row
    tr = max(128, (per_buffer_bytes // row_bytes) // 128 * 128)
    # Guarantee >= 2 grid steps when there is enough work (v7x: 2 TensorCores).
    if b_f > 128:
        tr = min(tr, max(128, _round_up(_cdiv(b_f, 2), 128)))
    else:
        tr = 128
    return tr


def logistic_regression_forward(x, w, b, *, tile_rows=None, xla_fallback_below=1024):
    """sigmoid(x @ w.T + b), matching nn.Linear(input_dim, 1) + sigmoid.

    x: (B, D) f32; w: (1, D) f32 (PyTorch nn.Linear layout); b: (1, 1) f32.
    Returns (B, 1) f32.
    """
    B, D = x.shape
    assert w.shape == (1, D) and b.shape == (1, 1)
    x = x.astype(jnp.float32)
    w = w.astype(jnp.float32)
    b = b.astype(jnp.float32)

    # Tiny batches: a fused XLA op is faster than one padded pallas_call step.
    if B < xla_fallback_below:
        return jax.nn.sigmoid(x @ w.T + b)

    # Row folding: pack `fold` batch rows into the 128-lane dim when D is small.
    fold = max(1, min(128 // D, 16)) if D < 128 else 1
    df = fold * D
    b_f = _cdiv(B, fold)                       # folded rows

    vmem_cap = _vmem_capacity_bytes()
    if tile_rows is not None:
        tr = max(128, _round_up(tile_rows, 128))
    else:
        tr = _choose_tile_rows(b_f, df, vmem_cap)
    tr = min(tr, _round_up(b_f, 128))          # never larger than the padded work

    b_f_pad = _round_up(b_f, tr)
    num_tiles = b_f_pad // tr
    rows_pad = b_f_pad * fold
    if rows_pad != B:
        x = jnp.pad(x, ((0, rows_pad - B), (0, 0)))
    x_folded = x.reshape(b_f_pad, df)          # free: contiguous HBM view

    # Segment-masked weights: row j holds W at lanes [j*D, (j+1)*D), zeros else.
    w_seg = jnp.kron(jnp.eye(fold, dtype=jnp.float32), w)      # (fold, df)

    vmem_limit = (48 if vmem_cap <= 64 * 1024 * 1024 else 80) * 1024 * 1024

    out = pl.pallas_call(
        functools.partial(_logreg_kernel, fold=fold),
        out_shape=jax.ShapeDtypeStruct((fold, b_f_pad), jnp.float32),
        grid_spec=pltpu.PrefetchScalarGridSpec(
            num_scalar_prefetch=0,
            grid=(num_tiles,),
            in_specs=[
                pl.BlockSpec((tr, df), lambda i: (i, 0)),             # stream x tiles
                pl.BlockSpec((fold, df), lambda i: (0, 0)),           # resident weights
                pl.BlockSpec(memory_space=pltpu.MemorySpace.SMEM),    # scalar bias
            ],
            out_specs=pl.BlockSpec((fold, tr), lambda i: (0, i)),     # lane-dense out
        ),
        compiler_params=pltpu.CompilerParams(
            dimension_semantics=("parallel",),     # tiles independent (v7x 2 TCs)
            vmem_limit_bytes=vmem_limit,
        ),
    )(x_folded, w_seg, b)

    # out[j, r] corresponds to original row r*fold + j -> transpose restores order.
    return out.T.reshape(-1)[:B].reshape(B, 1)


if __name__ == "__main__":
    key = jax.random.PRNGKey(0)

    # Shapes consistent with the module: batch=8, input_dim=32.
    batch, input_dim = 8, 32
    kx, kw, kb, kx2 = jax.random.split(key, 4)
    x = jax.random.normal(kx, (batch, input_dim), dtype=jnp.float32)
    w = jax.random.normal(kw, (1, input_dim), dtype=jnp.float32) * 0.1   # PyTorch layout
    bias = jax.random.normal(kb, (1, 1), dtype=jnp.float32) * 0.1
    ref = jax.nn.sigmoid(x @ w.T + bias[0, 0])

    # 1) Tiny batch forced through the Pallas path (correctness of the kernel).
    out = jax.block_until_ready(
        logistic_regression_forward(x, w, bias, xla_fallback_below=0))
    assert out.shape == (batch, 1)
    assert jnp.allclose(out, ref, atol=1e-5, rtol=1e-5)

    # 2) Tiny batch via the default XLA fallback (avoids padding 8 -> 512 rows).
    out_fb = jax.block_until_ready(logistic_regression_forward(x, w, bias))
    assert out_fb.shape == (batch, 1)
    assert jnp.allclose(out_fb, ref, atol=1e-5, rtol=1e-5)

    # 3) Ragged larger batch exercising the multi-tile grid, row fold and padding.
    batch2 = 3000
    x2 = jax.random.normal(kx2, (batch2, input_dim), dtype=jnp.float32)
    out2 = jax.block_until_ready(
        logistic_regression_forward(x2, w, bias, tile_rows=256))
    ref2 = jax.nn.sigmoid(x2 @ w.T + bias[0, 0])
    assert out2.shape == (batch2, 1)
    assert jnp.allclose(out2, ref2, atol=1e-5, rtol=1e-5)

    print("KERNEL_OK")
</pallas_src>

<mosaic_0001>
module attributes {stable_mosaic.version = 11 : i64} {
  func.func @_logreg_kernel(%arg0: i32, %arg1: memref<128x128xf32, #tpu.memory_space<vmem>>, %arg2: memref<4x128xf32, #tpu.memory_space<vmem>>, %arg3: memref<1x1xf32, #tpu.memory_space<smem>>, %arg4: memref<4x128xf32, #tpu.memory_space<vmem>>) attributes {dimension_semantics = [#tpu.dimension_semantics<parallel>], iteration_bounds = array<i64: 1>, scalar_prefetch = 0 : i64, scratch_operands = 0 : i64, tpu.core_type = #tpu.core_type<tc>, window_params = [{transform_indices = @transform_0, window_bounds = array<i64: 128, 128>}, {pipeline_mode = #tpu.pipeline_mode<synchronous>, transform_indices = @transform_1, window_bounds = array<i64: 4, 128>}, {transform_indices = @transform_2, window_bounds = array<i64: 1, 1>}, {transform_indices = @transform_3, window_bounds = array<i64: 4, 128>}]} {
    %c0 = arith.constant 0 : index
    %c0_0 = arith.constant 0 : index
    %0 = vector.load %arg1[%c0, %c0_0] : memref<128x128xf32, #tpu.memory_space<vmem>>, vector<128x128xf32>
    %c0_1 = arith.constant 0 : index
    %c0_2 = arith.constant 0 : index
    %1 = memref.load %arg3[%c0_1, %c0_2] : memref<1x1xf32, #tpu.memory_space<smem>>
    %c0_3 = arith.constant 0 : index
    %c0_4 = arith.constant 0 : index
    %2 = vector.load %arg2[%c0_3, %c0_4] : memref<4x128xf32, #tpu.memory_space<vmem>>, vector<1x128xf32>
    %3 = vector.broadcast %2 : vector<1x128xf32> to vector<128x128xf32>
    %4 = arith.mulf %0, %3 : vector<128x128xf32>
    %cst = arith.constant dense<0.000000e+00> : vector<128xf32>
    %5 = vector.multi_reduction <add>, %4, %cst [1] : vector<128x128xf32> to vector<128xf32>
    %6 = vector.broadcast %1 : f32 to vector<128xf32>
    %7 = arith.addf %5, %6 : vector<128xf32>
    %8 = arith.negf %7 : vector<128xf32>
    %9 = math.exp %8 : vector<128xf32>
    %cst_5 = arith.constant 1.000000e+00 : f32
    %10 = vector.broadcast %cst_5 : f32 to vector<128xf32>
    %11 = arith.addf %10, %9 : vector<128xf32>
    %12 = arith.divf %10, %11 : vector<128xf32>
    %13 = vector.shape_cast %12 : vector<128xf32> to vector<1x128xf32>
    %c0_6 = arith.constant 0 : index
    %c0_7 = arith.constant 0 : index
    %14 = vector.load %arg4[%c0_6, %c0_7] : memref<4x128xf32, #tpu.memory_space<vmem>>, vector<1x128xf32>
    tpu.vector_store %arg4[%c0_6, %c0_7], %13 {strides = array<i32>} : memref<4x128xf32, #tpu.memory_space<vmem>>, vector<1x128xf32>,
    %c1 = arith.constant 1 : index
    %c0_8 = arith.constant 0 : index
    %15 = vector.load %arg2[%c1, %c0_8] : memref<4x128xf32, #tpu.memory_space<vmem>>, vector<1x128xf32>
    %16 = vector.broadcast %15 : vector<1x128xf32> to vector<128x128xf32>
    %17 = arith.mulf %0, %16 : vector<128x128xf32>
    %cst_9 = arith.constant dense<0.000000e+00> : vector<128xf32>
    %18 = vector.multi_reduction <add>, %17, %cst_9 [1] : vector<128x128xf32> to vector<128xf32>
    %19 = vector.broadcast %1 : f32 to vector<128xf32>
    %20 = arith.addf %18, %19 : vector<128xf32>
    %21 = arith.negf %20 : vector<128xf32>
    %22 = math.exp %21 : vector<128xf32>
    %cst_10 = arith.constant 1.000000e+00 : f32
    %23 = vector.broadcast %cst_10 : f32 to vector<128xf32>
    %24 = arith.addf %23, %22 : vector<128xf32>
    %25 = arith.divf %23, %24 : vector<128xf32>
    %26 = vector.shape_cast %25 : vector<128xf32> to vector<1x128xf32>
    %c1_11 = arith.constant 1 : index
    %c0_12 = arith.constant 0 : index
    %27 = vector.load %arg4[%c1_11, %c0_12] : memref<4x128xf32, #tpu.memory_space<vmem>>, vector<1x128xf32>
    tpu.vector_store %arg4[%c1_11, %c0_12], %26 {strides = array<i32>} : memref<4x128xf32, #tpu.memory_space<vmem>>, vector<1x128xf32>,
    %c2 = arith.constant 2 : index
    %c0_13 = arith.constant 0 : index
    %28 = vector.load %arg2[%c2, %c0_13] : memref<4x128xf32, #tpu.memory_space<vmem>>, vector<1x128xf32>
    %29 = vector.broadcast %28 : vector<1x128xf32> to vector<128x128xf32>
    %30 = arith.mulf %0, %29 : vector<128x128xf32>
    %cst_14 = arith.constant dense<0.000000e+00> : vector<128xf32>
    %31 = vector.multi_reduction <add>, %30, %cst_14 [1] : vector<128x128xf32> to vector<128xf32>
    %32 = vector.broadcast %1 : f32 to vector<128xf32>
    %33 = arith.addf %31, %32 : vector<128xf32>
    %34 = arith.negf %33 : vector<128xf32>
    %35 = math.exp %34 : vector<128xf32>
    %cst_15 = arith.constant 1.000000e+00 : f32
    %36 = vector.broadcast %cst_15 : f32 to vector<128xf32>
    %37 = arith.addf %36, %35 : vector<128xf32>
    %38 = arith.divf %36, %37 : vector<128xf32>
    %39 = vector.shape_cast %38 : vector<128xf32> to vector<1x128xf32>
    %c2_16 = arith.constant 2 : index
    %c0_17 = arith.constant 0 : index
    %40 = vector.load %arg4[%c2_16, %c0_17] : memref<4x128xf32, #tpu.memory_space<vmem>>, vector<1x128xf32>
    tpu.vector_store %arg4[%c2_16, %c0_17], %39 {strides = array<i32>} : memref<4x128xf32, #tpu.memory_space<vmem>>, vector<1x128xf32>,
    %c3 = arith.constant 3 : index
    %c0_18 = arith.constant 0 : index
    %41 = vector.load %arg2[%c3, %c0_18] : memref<4x128xf32, #tpu.memory_space<vmem>>, vector<1x128xf32>
    %42 = vector.broadcast %41 : vector<1x128xf32> to vector<128x128xf32>
    %43 = arith.mulf %0, %42 : vector<128x128xf32>
    %cst_19 = arith.constant dense<0.000000e+00> : vector<128xf32>
    %44 = vector.multi_reduction <add>, %43, %cst_19 [1] : vector<128x128xf32> to vector<128xf32>
    %45 = vector.broadcast %1 : f32 to vector<128xf32>
    %46 = arith.addf %44, %45 : vector<128xf32>
    %47 = arith.negf %46 : vector<128xf32>
    %48 = math.exp %47 : vector<128xf32>
    %cst_20 = arith.constant 1.000000e+00 : f32
    %49 = vector.broadcast %cst_20 : f32 to vector<128xf32>
    %50 = arith.addf %49, %48 : vector<128xf32>
    %51 = arith.divf %49, %50 : vector<128xf32>
    %52 = vector.shape_cast %51 : vector<128xf32> to vector<1x128xf32>
    %c3_21 = arith.constant 3 : index
    %c0_22 = arith.constant 0 : index
    %53 = vector.load %arg4[%c3_21, %c0_22] : memref<4x128xf32, #tpu.memory_space<vmem>>, vector<1x128xf32>
    tpu.vector_store %arg4[%c3_21, %c0_22], %52 {strides = array<i32>} : memref<4x128xf32, #tpu.memory_space<vmem>>, vector<1x128xf32>,
    return
  }
  func.func @transform_0(%arg0: i32) -> (i32, i32) {
    %c0_i32 = arith.constant 0 : i32
    %c0_i32_0 = arith.constant 0 : i32
    return %arg0, %c0_i32 : i32, i32
  }
  func.func @transform_1(%arg0: i32) -> (i32, i32) {
    %c0_i32 = arith.constant 0 : i32
    %c0_i32_0 = arith.constant 0 : i32
    %c0_i32_1 = arith.constant 0 : i32
    return %c0_i32, %c0_i32_0 : i32, i32
  }
  func.func @transform_2(%arg0: i32) -> (i32, i32) {
    %c0_i32 = arith.constant 0 : i32
    %c0_i32_0 = arith.constant 0 : i32
    %c0_i32_1 = arith.constant 0 : i32
    return %c0_i32, %c0_i32_0 : i32, i32
  }
  func.func @transform_3(%arg0: i32) -> (i32, i32) {
    %c0_i32 = arith.constant 0 : i32
    %c0_i32_0 = arith.constant 0 : i32
    return %c0_i32, %arg0 : i32, i32
  }
}

</mosaic_0001>

<bundles_post_ra>
// kernel: tpu_custom_call.1
= control target key start
LH: loop header
LB: loop body
LE: loop exit
PB: predicated region body
PF: predicated region fallthrough
CT: control target
= control target key end

     0   :  { %9 = vsyncpa [#allocation4], 0  ;;  %s2005_s0 = inlined_call_operand.hbm [shape: f32[128,128], index: 0, kind: input, shape index: {}]   ;;  %s2006_s1 = inlined_call_operand.vmem [shape: f32[4,128], index: 1, kind: input, shape index: {}]   ;;  %s2007_s2 = inlined_call_operand.<no memory space> [shape: f32[1,1], index: 2, kind: input, shape index: {}]   ;;  %s2008_s3 = inlined_call_operand.hbm [shape: f32[4,128], index: 3, kind: output, shape index: {}]  }
   0x1   :  { %10 = vsyncpa [#allocation5], 0  ;;  %s1519_s12 = smov [#allocation3]   ;;  %s1471_s16 = scalar_lea.hbm %s2005_s0, 2048 }
   0x2   :  { %s16_s13 = sshll.u32 %s1519_s12, 4  ;;  %p1472_p0 = scmp.ne.s32.totalorder %s2005_s0, %s1471_s16  ;;  %s17_s13 = int_to_ptr.vmem [resolvable:$true] %s16_s13 }
   0x3   :  { %p1475_p1 = scmp.lt.u32.totalorder %s1471_s16, %s2005_s0 }
   0x5   :  { %p1477_p2 = pnand %p1475_p1, %p1472_p0 }
   0x7   :  { %1480 = shalt.err (!%p1477_p2)
}
   0x8   :  { %s1481_s21 = scalar_lea.vmem %s17_s13, 2048  ;;  %p1486_p4 = scmp.lt.s32.totalorder %s17_s13, %s17_s13 }
   0x9   :  { %p1482_p3 = scmp.ne.s32.totalorder %s17_s13, %s1481_s21  ;;  %p1487_p5 = scmp.lt.s32.totalorder %s1481_s21, %s1481_s21 }
   0xb   :  { %p1488_p6 = por %p1487_p5, %p1486_p4 }
   0xd   :  { %p1489_p7 = pnand %p1488_p6, %p1482_p3 }
   0xf   :  { %1492 = shalt.err (!%p1489_p7)
}
  0x10   :  { %s1520_s22 = smov 128   ;;  %s1521_s23 = smov 8  }
  0x11   :  { %22 = dma.hbm_to_vmem [thread:$0]  %s2005_s0, 2048, %s17_s13, [#allocation4], %s1520_s22, %s1520_s22, %s1521_s23  }
  0x12   :  { %1515 = dma.done.wait [#allocation4], 2048  }
  0x13   :  { %1516 = vsyncadd [#allocation4], 4294965248  ;;  %v32_v0 = vld [vmem:[#allocation3 + $0x10] sm:$0xff]  ;;  %v1558_v1 = vld [vmem:[%s2006_s1] ss:$0 sm:$0xff]  ;;  %vm240_vm0 = vcmask 130112  }
  0x14   :  { %v30_v2 = vld [vmem:[#allocation3] sm:$0xff]  ;;  %v54_v3 = vmul.f32 %v1558_v1, %v32_v0  ;;  %v33_v5 = vld [vmem:[#allocation3 + $0x18] sm:$0xff]  ;;  %v31_v6 = vld [vmem:[#allocation3 + $0x8] sm:$0xff]  ;;  %vm247_vm1 = vcmask 195712   ;;  %vm254_vm2 = vcmask 261312   ;;  %vm261_vm3 = vcmask 326912  }
  0x15   :  { %v52_v4 = vmul.f32 %v1558_v1, %v30_v2  ;;  %v55_v7 = vmul.f32 %v1558_v1, %v33_v5  ;;  %v53_v8 = vmul.f32 %v1558_v1, %v31_v6  ;;  %v1567_v9 = vld [vmem:[%s2006_s1 + $0x1] ss:$0 sm:$0xff]  ;;  %v1574_v13 = vld [vmem:[%s2006_s1 + $0x2] ss:$0 sm:$0xff]  ;;  %v1581_v16 = vld [vmem:[%s2006_s1 + $0x3] ss:$0 sm:$0xff] }
  0x16   :  { %72 = vadd.xlane.f32.xlu1 %v54_v3  ;;  %v34_v10 = vld [vmem:[#allocation3 + $0x20] sm:$0xff]  ;;  %v347_v11 = vmul.f32 %v1567_v9, %v30_v2  ;;  %v609_v14 = vmul.f32 %v1574_v13, %v30_v2  ;;  %v348_v15 = vmul.f32 %v1567_v9, %v31_v6  ;;  %v871_v17 = vmul.f32 %v1581_v16, %v30_v2  ;;  %v35_v29 = vld [vmem:[#allocation3 + $0x28] sm:$0xff]  ;;  %v36_v34 = vld [vmem:[#allocation3 + $0x30] sm:$0xff] }
  0x17   :  { %68 = vadd.xlane.f32.xlu0 %v52_v4  ;;  %v56_v12 = vmul.f32 %v1558_v1, %v34_v10  ;;  %v610_v18 = vmul.f32 %v1574_v13, %v31_v6  ;;  %v349_v19 = vmul.f32 %v1567_v9, %v32_v0  ;;  %v872_v20 = vmul.f32 %v1581_v16, %v31_v6  ;;  %v37_v39 = vld [vmem:[#allocation3 + $0x38] sm:$0xff]  ;;  %v38_v44 = vld [vmem:[#allocation3 + $0x40] sm:$0xff]  ;;  %v39_v49 = vld [vmem:[#allocation3 + $0x48] sm:$0xff] }
  0x18   :  { %v873_v21 = vmul.f32 %v1581_v16, %v32_v0  ;;  %v611_v22 = vmul.f32 %v1574_v13, %v32_v0  ;;  %v612_v23 = vmul.f32 %v1574_v13, %v33_v5  ;;  %v350_v24 = vmul.f32 %v1567_v9, %v33_v5  ;;  %v40_v54 = vld [vmem:[#allocation3 + $0x50] sm:$0xff]  ;;  %v41_v59 = vld [vmem:[#allocation3 + $0x58] sm:$0xff]  ;;  %v42_v0 = vld [vmem:[#allocation3 + $0x60] sm:$0xff] }
  0x19   :  { %v351_v25 = vmul.f32 %v1567_v9, %v34_v10  ;;  %v874_v26 = vmul.f32 %v1581_v16, %v33_v5  ;;  %v875_v27 = vmul.f32 %v1581_v16, %v34_v10  ;;  %v613_v28 = vmul.f32 %v1574_v13, %v34_v10  ;;  %v43_v6 = vld [vmem:[#allocation3 + $0x68] sm:$0xff] }
  0x1a   :  { %74 = vadd.xlane.f32.xlu1 %v55_v7  ;;  %v352_v30 = vmul.f32 %v1567_v9, %v35_v29  ;;  %v57_v31 = vmul.f32 %v1558_v1, %v35_v29  ;;  %v876_v32 = vmul.f32 %v1581_v16, %v35_v29  ;;  %v614_v33 = vmul.f32 %v1574_v13, %v35_v29 }
  0x1b   :  { %70 = vadd.xlane.f32.xlu0 %v53_v8  ;;  %v353_v35 = vmul.f32 %v1567_v9, %v36_v34  ;;  %v58_v36 = vmul.f32 %v1558_v1, %v36_v34  ;;  %v877_v37 = vmul.f32 %v1581_v16, %v36_v34  ;;  %v615_v38 = vmul.f32 %v1574_v13, %v36_v34 }
  0x1c   :  { %v354_v40 = vmul.f32 %v1567_v9, %v37_v39  ;;  %v59_v41 = vmul.f32 %v1558_v1, %v37_v39  ;;  %v878_v42 = vmul.f32 %v1581_v16, %v37_v39  ;;  %v616_v43 = vmul.f32 %v1574_v13, %v37_v39 }
  0x1d   :  { %v355_v45 = vmul.f32 %v1567_v9, %v38_v44  ;;  %v60_v46 = vmul.f32 %v1558_v1, %v38_v44  ;;  %v879_v47 = vmul.f32 %v1581_v16, %v38_v44  ;;  %v617_v48 = vmul.f32 %v1574_v13, %v38_v44 }
  0x1e   :  { %363 = vadd.xlane.f32.xlu1 %v347_v11  ;;  %v356_v50 = vmul.f32 %v1567_v9, %v39_v49  ;;  %v61_v51 = vmul.f32 %v1558_v1, %v39_v49  ;;  %v880_v52 = vmul.f32 %v1581_v16, %v39_v49  ;;  %v618_v53 = vmul.f32 %v1574_v13, %v39_v49 }
  0x1f   :  { %76 = vadd.xlane.f32.xlu0 %v56_v12  ;;  %v357_v55 = vmul.f32 %v1567_v9, %v40_v54  ;;  %v62_v56 = vmul.f32 %v1558_v1, %v40_v54  ;;  %v881_v57 = vmul.f32 %v1581_v16, %v40_v54  ;;  %v619_v58 = vmul.f32 %v1574_v13, %v40_v54  ;;  %v44_v12 = vld [vmem:[#allocation3 + $0x70] sm:$0xff] }
  0x20   :  { %v358_v60 = vmul.f32 %v1567_v9, %v41_v59  ;;  %v63_v61 = vmul.f32 %v1558_v1, %v41_v59  ;;  %v882_v62 = vmul.f32 %v1581_v16, %v41_v59  ;;  %v620_v63 = vmul.f32 %v1574_v13, %v41_v59 }
  0x21   :  { %v359_v2 = vmul.f32 %v1567_v9, %v42_v0  ;;  %v64_v3 = vmul.f32 %v1558_v1, %v42_v0  ;;  %v883_v4 = vmul.f32 %v1581_v16, %v42_v0  ;;  %v621_v5 = vmul.f32 %v1574_v13, %v42_v0 }
  0x22   :  { %625 = vadd.xlane.f32.xlu1 %v609_v14  ;;  %v360_v7 = vmul.f32 %v1567_v9, %v43_v6  ;;  %v65_v8 = vmul.f32 %v1558_v1, %v43_v6  ;;  %v884_v10 = vmul.f32 %v1581_v16, %v43_v6  ;;  %v622_v11 = vmul.f32 %v1574_v13, %v43_v6 }
  0x23   :  { %365 = vadd.xlane.f32.xlu0 %v348_v15  ;;  %v361_v14 = vmul.f32 %v1567_v9, %v44_v12  ;;  %v66_v15 = vmul.f32 %v1558_v1, %v44_v12  ;;  %vm268_vm4 = vcmask 392512   ;;  %vm275_vm5 = vcmask 458112  }
  0x24   :  { %vm282_vm6 = vcmask 523712   ;;  %vm289_vm7 = vcmask 589312   ;;  %vm296_vm8 = vcmask 654912   ;;  %vm303_vm9 = vcmask 720512  }
  0x25   :  { %vm310_vm10 = vcmask 786112   ;;  %vm317_vm11 = vcmask 851712   ;;  %vm324_vm12 = vcmask 917312   ;;  %vm331_vm13 = vcmask 982912  }
  0x26   :  { %887 = vadd.xlane.f32.xlu1 %v871_v17  ;;  %v885_v17 = vmul.f32 %v1581_v16, %v44_v12  ;;  %vm338_vm14 = vcmask 1048512  }
  0x27   :  { %627 = vadd.xlane.f32.xlu0 %v610_v18  ;;  %v623_v18 = vmul.f32 %v1574_v13, %v44_v12 }
  0x2a   :  { %367 = vadd.xlane.f32.xlu1 %v349_v19  ;;  %v45_v19 = vld [vmem:[#allocation3 + $0x78] sm:$0xff] }
  0x2b   :  { %889 = vadd.xlane.f32.xlu0 %v872_v20  ;;  %v362_v20 = vmul.f32 %v1567_v9, %v45_v19 }
  0x2e   :  { %891 = vadd.xlane.f32.xlu1 %v873_v21  ;;  %v67_v21 = vmul.f32 %v1558_v1, %v45_v19 }
  0x2f   :  { %629 = vadd.xlane.f32.xlu0 %v611_v22  ;;  %v886_v22 = vmul.f32 %v1581_v16, %v45_v19 }
  0x32   :  { %631 = vadd.xlane.f32.xlu1 %v612_v23  ;;  %v624_v23 = vmul.f32 %v1574_v13, %v45_v19 }
  0x33   :  { %369 = vadd.xlane.f32.xlu0 %v350_v24  ;;  %v1642_v24 = vstv %s2007_s2  ;;  %s1522_s2 = smov [#allocation6]  }
  0x34   :  { %s1134_s7 = sshll.u32 %s1522_s2, 4  ;;  %s1135_s7 = int_to_ptr.vmem [resolvable:$true] %s1134_s7 }
  0x35   :  { %s1493_s8 = scalar_lea.vmem %s1135_s7, 64  ;;  %p1498_p9 = scmp.lt.s32.totalorder %s1135_s7, %s1135_s7 }
  0x36   :  { %371 = vadd.xlane.f32.xlu1 %v351_v25  ;;  %p1494_p8 = scmp.ne.s32.totalorder %s1135_s7, %s1493_s8  ;;  %p1499_p10 = scmp.lt.s32.totalorder %s1493_s8, %s1493_s8 }
  0x37   :  { %893 = vadd.xlane.f32.xlu0 %v874_v26 }
  0x38   :  { %p1500_p11 = por %p1499_p10, %p1498_p9 }
  0x3a   :  { %895 = vadd.xlane.f32.xlu1 %v875_v27  ;;  %p1501_p12 = pnand %p1500_p11, %p1494_p8 }
  0x3b   :  { %633 = vadd.xlane.f32.xlu0 %v613_v28 }
  0x3e   :  { %373 = vadd.xlane.f32.xlu1 %v352_v30 }
  0x3f   :  { %78 = vadd.xlane.f32.xlu0 %v57_v31 }
  0x42   :  { %897 = vadd.xlane.f32.xlu1 %v876_v32 }
  0x43   :  { %635 = vadd.xlane.f32.xlu0 %v614_v33 }
  0x46   :  { %375 = vadd.xlane.f32.xlu1 %v353_v35 }
  0x47   :  { %80 = vadd.xlane.f32.xlu0 %v58_v36 }
  0x4a   :  { %899 = vadd.xlane.f32.xlu1 %v877_v37 }
  0x4b   :  { %637 = vadd.xlane.f32.xlu0 %v615_v38 }
  0x4e   :  { %377 = vadd.xlane.f32.xlu1 %v354_v40 }
  0x4f   :  { %82 = vadd.xlane.f32.xlu0 %v59_v41 }
  0x52   :  { %901 = vadd.xlane.f32.xlu1 %v878_v42 }
  0x53   :  { %639 = vadd.xlane.f32.xlu0 %v616_v43 }
  0x56   :  { %379 = vadd.xlane.f32.xlu1 %v355_v45 }
  0x57   :  { %84 = vadd.xlane.f32.xlu0 %v60_v46  ;;  %v229_v46 = vlaneseq }
  0x5a   :  { %903 = vadd.xlane.f32.xlu1 %v879_v47 }
  0x5b   :  { %641 = vadd.xlane.f32.xlu0 %v617_v48 }
  0x5e   :  { %381 = vadd.xlane.f32.xlu1 %v356_v50 }
  0x5f   :  { %86 = vadd.xlane.f32.xlu0 %v61_v51 }
  0x62   :  { %905 = vadd.xlane.f32.xlu1 %v880_v52 }
  0x63   :  { %643 = vadd.xlane.f32.xlu0 %v618_v53 }
  0x66   :  { %383 = vadd.xlane.f32.xlu1 %v357_v55 }
  0x67   :  { %88 = vadd.xlane.f32.xlu0 %v62_v56 }
  0x6a   :  { %907 = vadd.xlane.f32.xlu1 %v881_v57  ;;  %v1654_v57 = vand.u32 127, %v229_v46 }
  0x6b   :  { %645 = vadd.xlane.f32.xlu0 %v619_v58 }
  0x6c   :  { %v242_v6 = vadd.s32 4294967280, %v1654_v57 }
  0x6e   :  { %385 = vadd.xlane.f32.xlu1 %v358_v60 }
  0x6f   :  { %90 = vadd.xlane.f32.xlu0 %v63_v61 }
  0x72   :  { %909 = vadd.xlane.f32.xlu1 %v882_v62 }
  0x73   :  { %647 = vadd.xlane.f32.xlu0 %v620_v63 }
  0x76   :  { %387 = vadd.xlane.f32.xlu1 %v359_v2 }
  0x77   :  { %92 = vadd.xlane.f32.xlu0 %v64_v3 }
  0x7a   :  { %911 = vadd.xlane.f32.xlu1 %v883_v4 }
  0x7b   :  { %649 = vadd.xlane.f32.xlu0 %v621_v5  ;;  %v1658_v5 = vshrl.u32 %v229_v46, 7 }
  0x7e   :  { %389 = vadd.xlane.f32.xlu1 %v360_v7 }
  0x7f   :  { %94 = vadd.xlane.f32.xlu0 %v65_v8 }
  0x82   :  { %913 = vadd.xlane.f32.xlu1 %v884_v10 }
  0x83   :  { %651 = vadd.xlane.f32.xlu0 %v622_v11 }
  0x86   :  { %391 = vadd.xlane.f32.xlu1 %v361_v14 }
  0x87   :  { %96 = vadd.xlane.f32.xlu0 %v66_v15  ;;  %v249_v15 = vadd.s32 4294967272, %v1654_v57 }
  0x8a   :  { %915 = vadd.xlane.f32.xlu1 %v885_v17  ;;  %v235_v17 = vadd.s32 4294967288, %v1654_v57 }
  0x8b   :  { %653 = vadd.xlane.f32.xlu0 %v623_v18 }
  0x8e   :  { %393 = vadd.xlane.f32.xlu1 %v362_v20 }
  0x8f   :  { %98 = vadd.xlane.f32.xlu0 %v67_v21 }
  0x92   :  { %917 = vadd.xlane.f32.xlu1 %v886_v22 }
  0x93   :  { %655 = vadd.xlane.f32.xlu0 %v624_v23  ;;  %v1666_v23 = vsub.s32 %v242_v6, %v1658_v5 }
  0xa3   :  { %v73_v25 = vpop.xlane.xlu1 %72 }
  0xa4   :  { %v69_v26 = vpop.xlane.xlu0 %68  ;;  %v103_v27 = vadd.f32 %v1642_v24, %v73_v25  ;;  %v256_v25 = vadd.s32 4294967264, %v1654_v57 }
  0xa5   :  { %v101_v9 = vadd.f32 %v1642_v24, %v69_v26 }
  0xa6   :  { %v1146_v1 = vmul.f32 -1.442695, %v103_v27 }
  0xa7   :  { %v1144_v28 = vmul.f32 -1.442695, %v101_v9  ;;  %v75_v29 = vpop.xlane.xlu1 %74 }
  0xa8   :  { %v71_v30 = vpop.xlane.xlu0 %70  ;;  %1215 = vpow2.f32 %v1146_v1  ;;  %v104_v13 = vadd.f32 %v1642_v24, %v75_v29 }
  0xa9   :  { %v102_v16 = vadd.f32 %v1642_v24, %v71_v30  ;;  %1217 = vpow2.f32 %v1144_v28  ;;  %v1671_v28 = vsub.s32 %v1654_v57, %v1658_v5 }
  0xaa   :  { %v1147_v31 = vmul.f32 -1.442695, %v104_v13 }
  0xab   :  { %v1145_v32 = vmul.f32 -1.442695, %v102_v16  ;;  %v364_v33 = vpop.xlane.xlu1 %363  ;;  %v1676_v16 = vsub.s32 %v249_v15, %v1658_v5 }
  0xac   :  { %v77_v34 = vpop.xlane.xlu0 %76  ;;  %1219 = vpow2.f32 %v1147_v31  ;;  %v395_v35 = vadd.f32 %v364_v33, %v1642_v24  ;;  %v1679_v31 = vsub.s32 %v235_v17, %v1658_v5 }
  0xad   :  { %v105_v36 = vadd.f32 %v1642_v24, %v77_v34  ;;  %1221 = vpow2.f32 %v1145_v32 }
  0xae   :  { %v1161_v37 = vmul.f32 -1.442695, %v395_v35 }
  0xaf   :  { %v1148_v38 = vmul.f32 -1.442695, %v105_v36  ;;  %v626_v39 = vpop.xlane.xlu1 %625  ;;  %v1682_v36 = vsub.s32 %v256_v25, %v1658_v5 }
  0xb0   :  { %v366_v40 = vpop.xlane.xlu0 %365  ;;  %1223 = vpow2.f32 %v1161_v37  ;;  %v657_v41 = vadd.f32 %v626_v39, %v1642_v24 }
  0xb1   :  { %v396_v42 = vadd.f32 %v366_v40, %v1642_v24  ;;  %1225 = vpow2.f32 %v1148_v38 }
  0xb2   :  { %v1216_v43 = vpop.eup %1215  ;;  %v1178_v44 = vmul.f32 -1.442695, %v657_v41 }
  0xb3   :  { %v1218_v45 = vpop.eup %1217  ;;  %v167_v47 = vadd.f32 1.0, %v1216_v43  ;;  %v1162_v48 = vmul.f32 -1.442695, %v396_v42  ;;  %v888_v49 = vpop.xlane.xlu1 %887 }
  0xb4   :  { %v628_v50 = vpop.xlane.xlu0 %627  ;;  %v165_v51 = vadd.f32 1.0, %v1218_v45  ;;  %1227 = vpow2.f32 %v1178_v44  ;;  %v919_v52 = vadd.f32 %v888_v49, %v1642_v24 }
  0xb5   :  { %v658_v53 = vadd.f32 %v628_v50, %v1642_v24  ;;  %1229 = vrcp.f32 %v167_v47 }
  0xb6   :  { %v1220_v54 = vpop.eup %1219  ;;  %1231 = vrcp.f32 %v165_v51  ;;  %v1195_v55 = vmul.f32 -1.442695, %v919_v52 }
  0xb7   :  { %v1222_v56 = vpop.eup %1221  ;;  %v168_v58 = vadd.f32 1.0, %v1220_v54  ;;  %1233 = vpow2.f32 %v1162_v48  ;;  %v1179_v59 = vmul.f32 -1.442695, %v658_v53  ;;  %v368_v60 = vpop.xlane.xlu1 %367 }
  0xb8   :  { %v890_v61 = vpop.xlane.xlu0 %889  ;;  %v166_v62 = vadd.f32 1.0, %v1222_v56  ;;  %1235 = vpow2.f32 %v1195_v55  ;;  %v397_v63 = vadd.f32 %v368_v60, %v1642_v24 }
  0xb9   :  { %v920_v0 = vadd.f32 %v890_v61, %v1642_v24  ;;  %1237 = vrcp.f32 %v168_v58 }
  0xba   :  { %v1224_v2 = vpop.eup %1223  ;;  %1239 = vrcp.f32 %v166_v62  ;;  %v1163_v3 = vmul.f32 -1.442695, %v397_v63 }
  0xbb   :  { %v1226_v4 = vpop.eup %1225  ;;  %1241 = vpow2.f32 %v1179_v59  ;;  %v1196_v7 = vmul.f32 -1.442695, %v920_v0  ;;  %v892_v8 = vpop.xlane.xlu1 %891  ;;  %v459_v18 = vadd.f32 1.0, %v1224_v2 }
  0xbc   :  { %v630_v10 = vpop.xlane.xlu0 %629  ;;  %v169_v11 = vadd.f32 1.0, %v1226_v4  ;;  %1243 = vpow2.f32 %v1163_v3  ;;  %v921_v12 = vadd.f32 %v892_v8, %v1642_v24 }
  0xbd   :  { %v659_v14 = vadd.f32 %v630_v10, %v1642_v24 }
  0xbe   :  { %v1228_v19 = vpop.eup %1227  ;;  %1245 = vrcp.f32 %v169_v11  ;;  %v1197_v20 = vmul.f32 -1.442695, %v921_v12 }
  0xbf   :  { %v1180_v21 = vmul.f32 -1.442695, %v659_v14  ;;  %v1230_v22 = vpop.eup %1229  ;;  %v721_v26 = vadd.f32 1.0, %v1228_v19  ;;  %1247 = vpow2.f32 %v1196_v7  ;;  %v632_v27 = vpop.xlane.xlu1 %631 }
  0xc0   :  { %v370_v9 = vpop.xlane.xlu0 %369  ;;  %v1232_v1 = vpop.eup %1231  ;;  %1249 = vpow2.f32 %v1197_v20  ;;  %v660_v29 = vadd.f32 %v632_v27, %v1642_v24  ;;  %v246_v45 = vrot.slane %v1230_v22, %v1666_v23 }
  0xc1   :  { %v398_v30 = vadd.f32 %v370_v9, %v1642_v24  ;;  %v1234_v13 = vpop.eup %1233  ;;  %1251 = vrcp.f32 %v459_v18  ;;  %v234_v46 = vrot.slane %v1232_v1, %v1671_v28 }
  0xc2   :  { %v1236_v32 = vpop.eup %1235  ;;  %v460_v33 = vadd.f32 1.0, %v1234_v13  ;;  %1253 = vpow2.f32 %v1180_v21  ;;  %v1181_v34 = vmul.f32 -1.442695, %v660_v29 }
  0xc3   :  { %v1238_v35 = vpop.eup %1237  ;;  %1255 = vrcp.f32 %v721_v26  ;;  %v983_v37 = vadd.f32 1.0, %v1236_v32  ;;  %v1164_v38 = vmul.f32 -1.442695, %v398_v30  ;;  %v372_v39 = vpop.xlane.xlu1 %371 }
  0xc4   :  { %v894_v40 = vpop.xlane.xlu0 %893  ;;  %v1240_v41 = vpop.eup %1239  ;;  %1257 = vrcp.f32 %v460_v33  ;;  %v399_v42 = vadd.f32 %v372_v39, %v1642_v24  ;;  %v253_v49 = vrot.slane %v1238_v35, %v1676_v16 }
  0xc5   :  { %v922_v43 = vadd.f32 %v894_v40, %v1642_v24  ;;  %v1242_v44 = vpop.eup %1241  ;;  %v239_v47 = vrot.slane %v1240_v41, %v1679_v31  ;;  %1259 = vrcp.f32 %v983_v37 }
  0xc6   :  { %v1244_v48 = vpop.eup %1243  ;;  %v722_v50 = vadd.f32 1.0, %v1242_v44  ;;  %1261 = vpow2.f32 %v1181_v34  ;;  %v1165_v51 = vmul.f32 -1.442695, %v399_v42 }
  0xc7   :  { %v241_v52 = vsel %vm240_vm0, %v239_v47, %v234_v46  ;;  %v461_v53 = vadd.f32 1.0, %v1244_v48  ;;  %1263 = vpow2.f32 %v1164_v38  ;;  %v1198_v54 = vmul.f32 -1.442695, %v922_v43  ;;  %v896_v55 = vpop.xlane.xlu1 %895 }
  0xc8   :  { %v634_v56 = vpop.xlane.xlu0 %633  ;;  %v1246_v58 = vpop.eup %1245  ;;  %v248_v59 = vsel %vm247_vm1, %v246_v45, %v241_v52  ;;  %1265 = vrcp.f32 %v722_v50  ;;  %v923_v60 = vadd.f32 %v896_v55, %v1642_v24 }
  0xc9   :  { %v1248_v61 = vpop.eup %1247  ;;  %v255_v62 = vsel %vm254_vm2, %v253_v49, %v248_v59  ;;  %v260_v63 = vrot.slane %v1246_v58, %v1682_v36  ;;  %1267 = vrcp.f32 %v461_v53  ;;  %v661_v0 = vadd.f32 %v634_v56, %v1642_v24 }
  0xca   :  { %v1250_v2 = vpop.eup %1249  ;;  %v984_v3 = vadd.f32 1.0, %v1248_v61  ;;  %1269 = vpow2.f32 %v1165_v51  ;;  %v1199_v4 = vmul.f32 -1.442695, %v923_v60 }
  0xcb   :  { %v1252_v6 = vpop.eup %1251  ;;  %v1697_v7 = vsel %vm261_vm3, %v260_v63, %v255_v62  ;;  %v985_v8 = vadd.f32 1.0, %v1250_v2  ;;  %1271 = vpow2.f32 %v1198_v54  ;;  %v374_v10 = vpop.xlane.xlu1 %373  ;;  %v1182_v14 = vmul.f32 -1.442695, %v661_v0 }
  0xcc   :  { %v79_v11 = vpop.xlane.xlu0 %78  ;;  %v1254_v12 = vpop.eup %1253  ;;  %1273 = vrcp.f32 %v984_v3  ;;  %v400_v15 = vadd.f32 %v374_v10, %v1642_v24  ;;  %v526_v26 = vrot.slane %v1252_v6, %v1671_v28 }
  0xcd   :  { %v106_v17 = vadd.f32 %v1642_v24, %v79_v11  ;;  %v1256_v18 = vpop.eup %1255  ;;  %1275 = vrcp.f32 %v985_v8  ;;  %v723_v19 = vadd.f32 1.0, %v1254_v12 }
  0xce   :  { %v1258_v20 = vpop.eup %1257  ;;  %1277 = vpow2.f32 %v1199_v4  ;;  %v1166_v21 = vmul.f32 -1.442695, %v400_v15  ;;  %v788_v41 = vrot.slane %v1256_v18, %v1671_v28 }
  0xcf   :  { %v1149_v22 = vmul.f32 -1.442695, %v106_v17  ;;  %v1260_v25 = vpop.eup %1259  ;;  %v530_v27 = vrot.slane %v1258_v20, %v1679_v31  ;;  %1279 = vrcp.f32 %v723_v19  ;;  %v898_v9 = vpop.xlane.xlu1 %897 }
  0xd0   :  { %v636_v1 = vpop.xlane.xlu0 %635  ;;  %v1262_v29 = vpop.eup %1261  ;;  %1281 = vpow2.f32 %v1182_v14  ;;  %v924_v30 = vadd.f32 %v898_v9, %v1642_v24  ;;  %v1050_v58 = vrot.slane %v1260_v25, %v1671_v28 }
  0xd1   :  { %v662_v13 = vadd.f32 %v636_v1, %v1642_v24  ;;  %v1264_v32 = vpop.eup %1263  ;;  %v531_v33 = vsel %vm240_vm0, %v530_v27, %v526_v26  ;;  %v724_v34 = vadd.f32 1.0, %v1262_v29  ;;  %1283 = vpow2.f32 %v1166_v21 }
  0xd2   :  { %v1266_v35 = vpop.eup %1265  ;;  %v462_v37 = vadd.f32 1.0, %v1264_v32  ;;  %1285 = vpow2.f32 %v1149_v22  ;;  %v1200_v38 = vmul.f32 -1.442695, %v924_v30 }
  0xd3   :  { %v1183_v39 = vmul.f32 -1.442695, %v662_v13  ;;  %v1268_v40 = vpop.eup %1267  ;;  %v792_v42 = vrot.slane %v1266_v35, %v1679_v31  ;;  %1287 = vrcp.f32 %v724_v34  ;;  %v376_v43 = vpop.xlane.xlu1 %375  ;;  %v263_v13 = vadd.s32 4294967256, %v1654_v57 }
  0xd4   :  { %v81_v44 = vpop.xlane.xlu0 %80  ;;  %v1270_v45 = vpop.eup %1269  ;;  %v535_v46 = vrot.slane %v1268_v40, %v1666_v23  ;;  %1289 = vrcp.f32 %v462_v37  ;;  %v401_v47 = vadd.f32 %v376_v43, %v1642_v24 }
  0xd5   :  { %v107_v48 = vadd.f32 %v1642_v24, %v81_v44  ;;  %v1272_v49 = vpop.eup %1271  ;;  %v793_v50 = vsel %vm240_vm0, %v792_v42, %v788_v41  ;;  %v463_v51 = vadd.f32 1.0, %v1270_v45  ;;  %1291 = vpow2.f32 %v1200_v38 }
  0xd6   :  { %v1274_v52 = vpop.eup %1273  ;;  %v536_v53 = vsel %vm247_vm1, %v535_v46, %v531_v33  ;;  %v986_v54 = vadd.f32 1.0, %v1272_v49  ;;  %1293 = vpow2.f32 %v1183_v39  ;;  %v1167_v55 = vmul.f32 -1.442695, %v401_v47 }
  0xd7   :  { %v1276_v56 = vpop.eup %1275  ;;  %v1054_v59 = vrot.slane %v1274_v52, %v1679_v31  ;;  %1295 = vrcp.f32 %v463_v51  ;;  %v1150_v60 = vmul.f32 -1.442695, %v107_v48  ;;  %v900_v61 = vpop.xlane.xlu1 %899 }
  0xd8   :  { %v638_v62 = vpop.xlane.xlu0 %637  ;;  %v1278_v63 = vpop.eup %1277  ;;  %v1059_v0 = vrot.slane %v1276_v56, %v1666_v23  ;;  %1297 = vrcp.f32 %v986_v54  ;;  %v925_v2 = vadd.f32 %v900_v61, %v1642_v24 }
  0xd9   :  { %v663_v3 = vadd.f32 %v638_v62, %v1642_v24  ;;  %v1280_v4 = vpop.eup %1279  ;;  %v1055_v6 = vsel %vm240_vm0, %v1054_v59, %v1050_v58  ;;  %v987_v8 = vadd.f32 1.0, %v1278_v63  ;;  %1299 = vpow2.f32 %v1167_v55 }
  0xda   :  { %v1282_v28 = vpop.eup %1281  ;;  %v1060_v31 = vsel %vm247_vm1, %v1059_v0, %v1055_v6  ;;  %v797_v10 = vrot.slane %v1280_v4, %v1666_v23  ;;  %1301 = vpow2.f32 %v1150_v60  ;;  %v1201_v11 = vmul.f32 -1.442695, %v925_v2 }
  0xdb   :  { %v1284_v12 = vpop.eup %1283  ;;  %1303 = vrcp.f32 %v987_v8  ;;  %v725_v14 = vadd.f32 1.0, %v1282_v28  ;;  %v1184_v15 = vmul.f32 -1.442695, %v663_v3  ;;  %v378_v17 = vpop.xlane.xlu1 %377  ;;  %v266_v58 = vsub.s32 %v263_v13, %v1658_v5 }
  0xdc   :  { %v83_v18 = vpop.xlane.xlu0 %82  ;;  %v1286_v19 = vpop.eup %1285  ;;  %v798_v20 = vsel %vm247_vm1, %v797_v10, %v793_v50  ;;  %v464_v21 = vadd.f32 1.0, %v1284_v12  ;;  %1305 = vpow2.f32 %v1201_v11  ;;  %v402_v22 = vadd.f32 %v378_v17, %v1642_v24 }
  0xdd   :  { %v1288_v25 = vpop.eup %1287  ;;  %1307 = vrcp.f32 %v725_v14  ;;  %v170_v26 = vadd.f32 1.0, %v1286_v19  ;;  %v108_v23 = vadd.f32 %v1642_v24, %v83_v18 }
  0xde   :  { %v1290_v27 = vpop.eup %1289  ;;  %v802_v9 = vrot.slane %v1288_v25, %v1676_v16  ;;  %1309 = vrcp.f32 %v464_v21  ;;  %v1168_v1 = vmul.f32 -1.442695, %v402_v22 }
  0xdf   :  { %v1292_v29 = vpop.eup %1291  ;;  %v540_v30 = vrot.slane %v1290_v27, %v1676_v16  ;;  %1311 = vrcp.f32 %v170_v26  ;;  %v1151_v32 = vmul.f32 -1.442695, %v108_v23  ;;  %v902_v33 = vpop.xlane.xlu1 %901 }
  0xe0   :  { %v640_v34 = vpop.xlane.xlu0 %639  ;;  %v1294_v35 = vpop.eup %1293  ;;  %v803_v37 = vsel %vm254_vm2, %v802_v9, %v798_v20  ;;  %v988_v38 = vadd.f32 1.0, %v1292_v29  ;;  %1313 = vpow2.f32 %v1184_v15  ;;  %v926_v39 = vadd.f32 %v902_v33, %v1642_v24 }
  0xe1   :  { %v1296_v40 = vpop.eup %1295  ;;  %v541_v41 = vsel %vm254_vm2, %v540_v30, %v536_v53  ;;  %v726_v42 = vadd.f32 1.0, %v1294_v35  ;;  %1315 = vpow2.f32 %v1168_v1  ;;  %v664_v43 = vadd.f32 %v640_v34, %v1642_v24 }
  0xe2   :  { %v1298_v44 = vpop.eup %1297  ;;  %v545_v45 = vrot.slane %v1296_v40, %v1682_v36  ;;  %1317 = vrcp.f32 %v988_v38  ;;  %v1202_v48 = vmul.f32 -1.442695, %v926_v39 }
  0xe3   :  { %v1300_v46 = vpop.eup %1299  ;;  %v1064_v47 = vrot.slane %v1298_v44, %v1676_v16  ;;  %1319 = vrcp.f32 %v726_v42  ;;  %v380_v49 = vpop.xlane.xlu1 %379  ;;  %v1185_v53 = vmul.f32 -1.442695, %v664_v43 }
  0xe4   :  { %v85_v50 = vpop.xlane.xlu0 %84  ;;  %v1302_v51 = vpop.eup %1301  ;;  %v546_v52 = vsel %vm261_vm3, %v545_v45, %v541_v41  ;;  %1321 = vpow2.f32 %v1151_v32  ;;  %v403_v54 = vadd.f32 %v380_v49, %v1642_v24  ;;  %v465_v61 = vadd.f32 1.0, %v1300_v46 }
  0xe5   :  { %v1304_v55 = vpop.eup %1303  ;;  %v1065_v56 = vsel %vm254_vm2, %v1064_v47, %v1060_v31  ;;  %1323 = vpow2.f32 %v1202_v48  ;;  %v109_v63 = vadd.f32 %v1642_v24, %v85_v50  ;;  %v171_v10 = vadd.f32 1.0, %v1302_v51 }
  0xe6   :  { %v1306_v59 = vpop.eup %1305  ;;  %v1069_v60 = vrot.slane %v1304_v55, %v1682_v36  ;;  %v1169_v62 = vmul.f32 -1.442695, %v403_v54  ;;  %1325 = vpow2.f32 %v1185_v53 }
  0xe7   :  { %v1308_v16 = vpop.eup %1307  ;;  %v904_v0 = vpop.xlane.xlu1 %903  ;;  %v989_v15 = vadd.f32 1.0, %v1306_v59  ;;  %1327 = vrcp.f32 %v465_v61  ;;  %v1152_v20 = vmul.f32 -1.442695, %v109_v63 }
  0xe8   :  { %v642_v2 = vpop.xlane.xlu0 %641  ;;  %v1310_v3 = vpop.eup %1309  ;;  %v1070_v4 = vsel %vm261_vm3, %v1069_v60, %v1065_v56  ;;  %v807_v6 = vrot.slane %v1308_v16, %v1682_v36  ;;  %v927_v8 = vadd.f32 %v904_v0, %v1642_v24  ;;  %1329 = vpow2.f32 %v1169_v62 }
  0xe9   :  { %v1312_v28 = vpop.eup %1311  ;;  %v550_v31 = vrot.slane %v1310_v3, %v266_v58  ;;  %v665_v17 = vadd.f32 %v642_v2, %v1642_v24  ;;  %1331 = vrcp.f32 %v171_v10 }
  0xea   :  { %v1314_v11 = vpop.eup %1313  ;;  %v808_v12 = vsel %vm261_vm3, %v807_v6, %v803_v37  ;;  %v267_v14 = vrot.slane %v1312_v28, %v266_v58  ;;  %v1203_v26 = vmul.f32 -1.442695, %v927_v8  ;;  %1333 = vrcp.f32 %v989_v15 }
  0xeb   :  { %v1316_v18 = vpop.eup %1315  ;;  %v1745_v19 = vsel %vm268_vm4, %v550_v31, %v546_v52  ;;  %v382_v36 = vpop.xlane.xlu1 %381  ;;  %v727_v1 = vadd.f32 1.0, %v1314_v11  ;;  %v1186_v13 = vmul.f32 -1.442695, %v665_v17  ;;  %1335 = vpow2.f32 %v1152_v20 }
  0xec   :  { %v87_v21 = vpop.xlane.xlu0 %86  ;;  %v1318_v22 = vpop.eup %1317  ;;  %v1749_v25 = vsel %vm268_vm4, %v267_v14, %v1697_v7  ;;  %v404_v23 = vadd.f32 %v382_v36, %v1642_v24  ;;  %v466_v34 = vadd.f32 1.0, %v1316_v18  ;;  %1337 = vpow2.f32 %v1203_v26 }
  0xed   :  { %v1320_v27 = vpop.eup %1319  ;;  %v1074_v9 = vrot.slane %v1318_v22, %v266_v58  ;;  %v110_v32 = vadd.f32 %v1642_v24, %v87_v21  ;;  %1339 = vrcp.f32 %v727_v1 }
  0xee   :  { %v1322_v29 = vpop.eup %1321  ;;  %v812_v30 = vrot.slane %v1320_v27, %v266_v58  ;;  %v1170_v38 = vmul.f32 -1.442695, %v404_v23  ;;  %1341 = vpow2.f32 %v1186_v13 }
  0xef   :  { %v1754_v33 = vsel %vm268_vm4, %v1074_v9, %v1070_v4  ;;  %v906_v7 = vpop.xlane.xlu1 %905  ;;  %v1324_v40 = vpop.eup %1323  ;;  %v172_v41 = vadd.f32 1.0, %v1322_v29  ;;  %v1153_v43 = vmul.f32 -1.442695, %v110_v32  ;;  %1343 = vrcp.f32 %v466_v34 }
  0xf0   :  { %v644_v35 = vpop.xlane.xlu0 %643  ;;  %v1757_v37 = vsel %vm268_vm4, %v812_v30, %v808_v12  ;;  %v928_v39 = vadd.f32 %v906_v7, %v1642_v24  ;;  %v1326_v42 = vpop.eup %1325  ;;  %v990_v48 = vadd.f32 1.0, %v1324_v40  ;;  %1345 = vpow2.f32 %v1170_v38 }
  0xf1   :  { %v666_v44 = vadd.f32 %v644_v35, %v1642_v24  ;;  %v1762_v50 = vpop.eup %1327  ;;  %1347 = vrcp.f32 %v172_v41  ;;  %v728_v51 = vadd.f32 1.0, %v1326_v42 }
  0xf2   :  { %v1204_v45 = vmul.f32 -1.442695, %v928_v39  ;;  %v1330_v53 = vpop.eup %1329  ;;  %1349 = vpow2.f32 %v1153_v43 }
  0xf3   :  { %v384_v46 = vpop.xlane.xlu1 %383  ;;  %v1187_v54 = vmul.f32 -1.442695, %v666_v44  ;;  %v1765_v55 = vpop.eup %1331  ;;  %v467_v0 = vadd.f32 1.0, %v1330_v53 }
  0xf4   :  { %v89_v47 = vpop.xlane.xlu0 %88  ;;  %v405_v49 = vadd.f32 %v384_v46, %v1642_v24  ;;  %1351 = vpow2.f32 %v1204_v45  ;;  %v1767_v60 = vpop.eup %1333 }
  0xf5   :  { %v111_v52 = vadd.f32 %v1642_v24, %v89_v47  ;;  %1353 = vrcp.f32 %v990_v48  ;;  %v1336_v63 = vpop.eup %1335 }
  0xf6   :  { %v1171_v56 = vmul.f32 -1.442695, %v405_v49  ;;  %1355 = vrcp.f32 %v728_v51  ;;  %v1338_v2 = vpop.eup %1337  ;;  %v173_v10 = vadd.f32 1.0, %v1336_v63 }
  0xf7   :  { %v908_v58 = vpop.xlane.xlu1 %907  ;;  %v1154_v16 = vmul.f32 -1.442695, %v111_v52  ;;  %1357 = vpow2.f32 %v1187_v54  ;;  %v1771_v4 = vpop.eup %1339  ;;  %v991_v15 = vadd.f32 1.0, %v1338_v2 }
  0xf8   :  { %v646_v59 = vpop.xlane.xlu0 %645  ;;  %v929_v61 = vadd.f32 %v908_v58, %v1642_v24  ;;  %1359 = vpow2.f32 %v1171_v56  ;;  %v1342_v31 = vpop.eup %1341 }
  0xf9   :  { %v667_v62 = vadd.f32 %v646_v59, %v1642_v24  ;;  %1361 = vpow2.f32 %v1154_v16  ;;  %v1775_v14 = vpop.eup %1343  ;;  %v729_v36 = vadd.f32 1.0, %v1342_v31 }
  0xfa   :  { %v1205_v3 = vmul.f32 -1.442695, %v929_v61  ;;  %1363 = vrcp.f32 %v467_v0  ;;  %v1346_v17 = vpop.eup %1345 }
  0xfb   :  { %v1188_v6 = vmul.f32 -1.442695, %v667_v62  ;;  %v386_v8 = vpop.xlane.xlu1 %385  ;;  %v1777_v20 = vpop.eup %1347  ;;  %v468_v30 = vadd.f32 1.0, %v1346_v17 }
  0xfc   :  { %v91_v28 = vpop.xlane.xlu0 %90  ;;  %v406_v11 = vadd.f32 %v386_v8, %v1642_v24  ;;  %1365 = vpow2.f32 %v1205_v3  ;;  %v1350_v26 = vpop.eup %1349 }
  0xfd   :  { %v112_v12 = vadd.f32 %v1642_v24, %v91_v28  ;;  %1367 = vpow2.f32 %v1188_v6  ;;  %v174_v34 = vadd.f32 1.0, %v1350_v26 }
  0xfe   :  { %v1172_v18 = vmul.f32 -1.442695, %v406_v11  ;;  %1369 = vrcp.f32 %v173_v10  ;;  %v1352_v9 = vpop.eup %1351 }
  0xff   :  { %v910_v21 = vpop.xlane.xlu1 %909  ;;  %v1155_v23 = vmul.f32 -1.442695, %v112_v12  ;;  %1371 = vrcp.f32 %v991_v15  ;;  %v1781_v29 = vpop.eup %1353  ;;  %v992_v39 = vadd.f32 1.0, %v1352_v9 }
 0x100   :  { %v648_v22 = vpop.xlane.xlu0 %647  ;;  %v930_v27 = vadd.f32 %v910_v21, %v1642_v24  ;;  %1373 = vpow2.f32 %v1172_v18  ;;  %v1783_v32 = vpop.eup %1355 }
 0x101   :  { %v668_v1 = vadd.f32 %v648_v22, %v1642_v24  ;;  %1375 = vrcp.f32 %v729_v36  ;;  %v1358_v38 = vpop.eup %1357 }
 0x102   :  { %v1206_v13 = vmul.f32 -1.442695, %v930_v27  ;;  %1377 = vpow2.f32 %v1155_v23  ;;  %v1360_v41 = vpop.eup %1359  ;;  %v730_v47 = vadd.f32 1.0, %v1358_v38 }
 0x103   :  { %v388_v7 = vpop.xlane.xlu1 %387  ;;  %v1189_v42 = vmul.f32 -1.442695, %v668_v1  ;;  %v1362_v43 = vpop.eup %1361  ;;  %v469_v52 = vadd.f32 1.0, %v1360_v41 }
 0x104   :  { %v93_v35 = vpop.xlane.xlu0 %92  ;;  %v407_v40 = vadd.f32 %v388_v7, %v1642_v24  ;;  %1379 = vpow2.f32 %v1206_v13  ;;  %v1787_v46 = vpop.eup %1363  ;;  %v175_v54 = vadd.f32 1.0, %v1362_v43 }
 0x105   :  { %1381 = vrcp.f32 %v468_v30  ;;  %v113_v45 = vadd.f32 %v1642_v24, %v93_v35 }
 0x106   :  { %v1173_v44 = vmul.f32 -1.442695, %v407_v40  ;;  %1383 = vrcp.f32 %v174_v34  ;;  %v1366_v51 = vpop.eup %1365 }
 0x107   :  { %v912_v48 = vpop.xlane.xlu1 %911  ;;  %1385 = vrcp.f32 %v992_v39  ;;  %v1368_v53 = vpop.eup %1367  ;;  %v1156_v59 = vmul.f32 -1.442695, %v113_v45  ;;  %v993_v62 = vadd.f32 1.0, %v1366_v51 }
 0x108   :  { %v650_v49 = vpop.xlane.xlu0 %649  ;;  %1387 = vpow2.f32 %v1189_v42  ;;  %v931_v56 = vadd.f32 %v912_v48, %v1642_v24  ;;  %v1790_v58 = vpop.eup %1369  ;;  %v731_v3 = vadd.f32 1.0, %v1368_v53  ;;  %v277_v53 = vadd.s32 4294967240, %v1654_v57 }
 0x109   :  { %1389 = vpow2.f32 %v1173_v44  ;;  %v669_v16 = vadd.f32 %v650_v49, %v1642_v24  ;;  %v1793_v61 = vpop.eup %1371 }
 0x10a   :  { %1391 = vrcp.f32 %v730_v47  ;;  %v1374_v2 = vpop.eup %1373  ;;  %v1207_v28 = vmul.f32 -1.442695, %v931_v56  ;;  %v270_v47 = vadd.s32 4294967248, %v1654_v57 }
 0x10b   :  { %v390_v63 = vpop.xlane.xlu1 %389  ;;  %1393 = vrcp.f32 %v469_v52  ;;  %v1796_v8 = vpop.eup %1375  ;;  %v1190_v10 = vmul.f32 -1.442695, %v669_v16  ;;  %v470_v12 = vadd.f32 1.0, %v1374_v2  ;;  %v284_v16 = vadd.s32 4294967232, %v1654_v57 }
 0x10c   :  { %v95_v0 = vpop.xlane.xlu0 %94  ;;  %v408_v6 = vadd.f32 %v390_v63, %v1642_v24  ;;  %1395 = vrcp.f32 %v175_v54  ;;  %v1378_v31 = vpop.eup %1377  ;;  %v291_v2 = vadd.s32 4294967224, %v1654_v57 }
 0x10d   :  { %1397 = vpow2.f32 %v1156_v59  ;;  %v114_v15 = vadd.f32 %v1642_v24, %v95_v0  ;;  %v176_v23 = vadd.f32 1.0, %v1378_v31 }
 0x10e   :  { %v1380_v11 = vpop.eup %1379  ;;  %1399 = vrcp.f32 %v993_v62  ;;  %v1174_v21 = vmul.f32 -1.442695, %v408_v6 }
 0x10f   :  { %v914_v17 = vpop.xlane.xlu1 %913  ;;  %v1799_v36 = vpop.eup %1381  ;;  %1401 = vrcp.f32 %v731_v3  ;;  %v994_v9 = vadd.f32 1.0, %v1380_v11  ;;  %v1157_v30 = vmul.f32 -1.442695, %v114_v15  ;;  %v1827_v15 = vsub.s32 %v270_v47, %v1658_v5 }
 0x110   :  { %v652_v18 = vpop.xlane.xlu0 %651  ;;  %v932_v22 = vadd.f32 %v914_v17, %v1642_v24  ;;  %v1802_v26 = vpop.eup %1383  ;;  %1403 = vpow2.f32 %v1207_v28  ;;  %v298_v28 = vadd.s32 4294967216, %v1654_v57  ;;  %v312_v47 = vadd.s32 4294967200, %v1654_v57 }
 0x111   :  { %v1804_v27 = vpop.eup %1385  ;;  %1405 = vpow2.f32 %v1190_v10  ;;  %v670_v40 = vadd.f32 %v652_v18, %v1642_v24 }
 0x112   :  { %v1388_v1 = vpop.eup %1387  ;;  %1407 = vrcp.f32 %v470_v12  ;;  %v1208_v35 = vmul.f32 -1.442695, %v932_v22  ;;  %v1834_v22 = vsub.s32 %v277_v53, %v1658_v5  ;;  %v319_v53 = vadd.s32 4294967192, %v1654_v57 }
 0x113   :  { %v392_v13 = vpop.xlane.xlu1 %391  ;;  %v1390_v7 = vpop.eup %1389  ;;  %1409 = vpow2.f32 %v1174_v21  ;;  %v732_v43 = vadd.f32 1.0, %v1388_v1  ;;  %v1191_v62 = vmul.f32 -1.442695, %v670_v40 }
 0x114   :  { %v97_v34 = vpop.xlane.xlu0 %96  ;;  %v409_v38 = vadd.f32 %v392_v13, %v1642_v24  ;;  %v1807_v39 = vpop.eup %1391  ;;  %1411 = vrcp.f32 %v176_v23  ;;  %v471_v48 = vadd.f32 1.0, %v1390_v7  ;;  %v1837_v23 = vsub.s32 %v284_v16, %v1658_v5 }
 0x115   :  { %v115_v41 = vadd.f32 %v1642_v24, %v97_v34  ;;  %v1811_v42 = vpop.eup %1393  ;;  %1413 = vrcp.f32 %v994_v9 }
 0x116   :  { %v1175_v44 = vmul.f32 -1.442695, %v409_v38  ;;  %v1813_v45 = vpop.eup %1395  ;;  %1415 = vpow2.f32 %v1157_v30  ;;  %v1840_v30 = vsub.s32 %v291_v2, %v1658_v5  ;;  %v305_v38 = vadd.s32 4294967208, %v1654_v57 }
 0x117   :  { %v916_v49 = vpop.xlane.xlu1 %915  ;;  %v1398_v52 = vpop.eup %1397  ;;  %1417 = vpow2.f32 %v1208_v35  ;;  %v1158_v54 = vmul.f32 -1.442695, %v115_v41  ;;  %v1845_v35 = vsub.s32 %v298_v28, %v1658_v5 }
 0x118   :  { %v654_v51 = vpop.xlane.xlu0 %653  ;;  %v933_v56 = vadd.f32 %v916_v49, %v1642_v24  ;;  %v1818_v59 = vpop.eup %1399  ;;  %1419 = vpow2.f32 %v1175_v44  ;;  %v177_v9 = vadd.f32 1.0, %v1398_v52 }
 0x119   :  { %v671_v63 = vadd.f32 %v654_v51, %v1642_v24  ;;  %v1822_v0 = vpop.eup %1401  ;;  %1421 = vrcp.f32 %v732_v43 }
 0x11a   :  { %v1209_v3 = vmul.f32 -1.442695, %v933_v56  ;;  %v1404_v6 = vpop.eup %1403  ;;  %1423 = vrcp.f32 %v471_v48 }
 0x11b   :  { %v1192_v31 = vmul.f32 -1.442695, %v671_v63  ;;  %v394_v10 = vpop.xlane.xlu1 %393  ;;  %v1406_v12 = vpop.eup %1405  ;;  %1425 = vpow2.f32 %v1158_v54  ;;  %v995_v13 = vadd.f32 1.0, %v1404_v6  ;;  %v326_v54 = vadd.s32 4294967184, %v1654_v57 }
 0x11c   :  { %v99_v11 = vpop.xlane.xlu0 %98  ;;  %v410_v17 = vadd.f32 %v394_v10, %v1642_v24  ;;  %v1831_v21 = vpop.eup %1407  ;;  %1427 = vpow2.f32 %v1191_v62  ;;  %v733_v52 = vadd.f32 1.0, %v1406_v12  ;;  %v333_v63 = vadd.s32 4294967176, %v1654_v57 }
 0x11d   :  { %v116_v18 = vadd.f32 %v1642_v24, %v99_v11  ;;  %v1410_v1 = vpop.eup %1409  ;;  %1429 = vpow2.f32 %v1209_v3  ;;  %v555_v3 = vrot.slane %v1762_v50, %v1827_v15  ;;  %v1866_v10 = vsub.s32 %v312_v47, %v1658_v5 }
 0x11e   :  { %v1176_v34 = vmul.f32 -1.442695, %v410_v17  ;;  %v1842_v7 = vpop.eup %1411  ;;  %1431 = vpow2.f32 %v1192_v31  ;;  %v472_v16 = vadd.f32 1.0, %v1410_v1  ;;  %v274_v31 = vrot.slane %v1765_v55, %v1827_v15 }
 0x11f   :  { %v1159_v40 = vmul.f32 -1.442695, %v116_v18  ;;  %v918_v41 = vpop.xlane.xlu1 %917  ;;  %v1848_v44 = vpop.eup %1413  ;;  %v1871_v50 = vsub.s32 %v319_v53, %v1658_v5  ;;  %v1874_v17 = vsub.s32 %v326_v54, %v1658_v5  ;;  %v1879_v1 = vsub.s32 %v333_v63, %v1658_v5 }
 0x120   :  { %v656_v43 = vpop.xlane.xlu0 %655  ;;  %1433 = vpow2.f32 %v1176_v34  ;;  %v934_v48 = vadd.f32 %v918_v41, %v1642_v24  ;;  %v1416_v51 = vpop.eup %1415  ;;  %v556_v34 = vsel %vm275_vm5, %v555_v3, %v1745_v19  ;;  %v1084_v19 = vrot.slane %v1781_v29, %v1834_v22 }
 0x121   :  { %v672_v49 = vadd.f32 %v656_v43, %v1642_v24  ;;  %1435 = vrcp.f32 %v177_v9  ;;  %v1418_v56 = vpop.eup %1417  ;;  %v1859_v24 = vsub.s32 %v305_v38, %v1658_v5  ;;  %v178_v12 = vadd.f32 1.0, %v1416_v51 }
 0x122   :  { %1437 = vrcp.f32 %v995_v13  ;;  %v1210_v62 = vmul.f32 -1.442695, %v934_v48  ;;  %v1420_v2 = vpop.eup %1419  ;;  %v1079_v9 = vrot.slane %v1767_v60, %v1827_v15  ;;  %v996_v55 = vadd.f32 1.0, %v1418_v56 }
 0x123   :  { %1439 = vpow2.f32 %v1159_v40  ;;  %v1193_v6 = vmul.f32 -1.442695, %v672_v49  ;;  %v1861_v28 = vpop.eup %1421  ;;  %v473_v11 = vadd.f32 1.0, %v1420_v2  ;;  %v817_v38 = vrot.slane %v1771_v4, %v1827_v15 }
 0x124   :  { %1441 = vpow2.f32 %v1210_v62  ;;  %v1868_v57 = vpop.eup %1423  ;;  %v276_v43 = vsel %vm275_vm5, %v274_v31, %v1749_v25  ;;  %v560_v60 = vrot.slane %v1775_v14, %v1834_v22  ;;  %v281_v5 = vrot.slane %v1777_v20, %v1834_v22 }
 0x125   :  { %1443 = vrcp.f32 %v733_v52  ;;  %v1426_v18 = vpop.eup %1425  ;;  %v822_v4 = vrot.slane %v1783_v32, %v1834_v22  ;;  %v1080_v25 = vsel %vm275_vm5, %v1079_v9, %v1754_v33  ;;  %v565_v14 = vrot.slane %v1787_v46, %v1837_v23 }
 0x126   :  { %1445 = vrcp.f32 %v472_v16  ;;  %v1428_v13 = vpop.eup %1427  ;;  %v179_v40 = vadd.f32 1.0, %v1426_v18  ;;  %v818_v29 = vsel %vm275_vm5, %v817_v38, %v1757_v37  ;;  %v561_v52 = vsel %vm282_vm6, %v560_v60, %v556_v34 }
 0x127   :  { %1447 = vpow2.f32 %v1193_v6  ;;  %v1430_v41 = vpop.eup %1429  ;;  %v734_v20 = vadd.f32 1.0, %v1428_v13  ;;  %v283_v33 = vsel %vm282_vm6, %v281_v5, %v276_v43  ;;  %v288_v46 = vrot.slane %v1790_v58, %v1837_v23 }
 0x128   :  { %1449 = vrcp.f32 %v473_v11  ;;  %v1432_v47 = vpop.eup %1431  ;;  %v997_v15 = vadd.f32 1.0, %v1430_v41  ;;  %v1085_v54 = vsel %vm282_vm6, %v1084_v19, %v1080_v25  ;;  %v823_v37 = vsel %vm282_vm6, %v822_v4, %v818_v29 }
 0x129   :  { %1451 = vrcp.f32 %v178_v12  ;;  %v735_v51 = vadd.f32 1.0, %v1432_v47  ;;  %v1089_v56 = vrot.slane %v1793_v61, %v1837_v23  ;;  %v566_v62 = vsel %vm289_vm7, %v565_v14, %v561_v52 }
 0x12a   :  { %v1434_v48 = vpop.eup %1433  ;;  %1453 = vrcp.f32 %v996_v55  ;;  %v827_v63 = vrot.slane %v1796_v8, %v1837_v23  ;;  %v570_v3 = vrot.slane %v1799_v36, %v1840_v30  ;;  %v295_v6 = vrot.slane %v1802_v26, %v1840_v30 }
 0x12b   :  { %v1899_v49 = vpop.eup %1435  ;;  %1455 = vrcp.f32 %v179_v40  ;;  %v474_v32 = vadd.f32 1.0, %v1434_v48  ;;  %v290_v11 = vsel %vm289_vm7, %v288_v46, %v283_v33  ;;  %v1094_v8 = vrot.slane %v1804_v27, %v1840_v30 }
 0x12c   :  { %v1903_v22 = vpop.eup %1437  ;;  %1457 = vrcp.f32 %v997_v15  ;;  %v832_v23 = vrot.slane %v1807_v39, %v1840_v30  ;;  %v1090_v18 = vsel %vm289_vm7, %v1089_v56, %v1085_v54  ;;  %v575_v36 = vrot.slane %v1811_v42, %v1845_v35 }
 0x12d   :  { %v1440_v53 = vpop.eup %1439  ;;  %1459 = vrcp.f32 %v474_v32  ;;  %v302_v26 = vrot.slane %v1813_v45, %v1845_v35  ;;  %v828_v55 = vsel %vm289_vm7, %v827_v63, %v823_v37  ;;  %v1099_v27 = vrot.slane %v1818_v59, %v1845_v35 }
 0x12e   :  { %v1442_v16 = vpop.eup %1441  ;;  %1461 = vrcp.f32 %v734_v20  ;;  %v180_v58 = vadd.f32 1.0, %v1440_v53  ;;  %v580_v39 = vrot.slane %v1831_v21, %v1859_v24  ;;  %v571_v34 = vsel %vm296_vm8, %v570_v3, %v566_v62 }
 0x12f   :  { %v1916_v2 = vpop.eup %1443  ;;  %1463 = vrcp.f32 %v735_v51  ;;  %v998_v61 = vadd.f32 1.0, %v1442_v16  ;;  %v297_v38 = vsel %vm296_vm8, %v295_v6, %v290_v11  ;;  %v837_v42 = vrot.slane %v1822_v0, %v1845_v35 }
 0x130   :  { %v1446_v31 = vpop.eup %1445  ;;  %1465 = vrcp.f32 %v180_v58  ;;  %v585_v45 = vrot.slane %v1868_v57, %v1866_v10  ;;  %v1095_v41 = vsel %vm296_vm8, %v1094_v8, %v1090_v18  ;;  %v833_v59 = vsel %vm296_vm8, %v832_v23, %v828_v55 }
 0x131   :  { %v1448_v12 = vpop.eup %1447  ;;  %1467 = vrcp.f32 %v998_v61  ;;  %v590_v43 = vrot.slane %v1446_v31, %v1871_v50  ;;  %v576_v60 = vsel %vm303_vm9, %v575_v36, %v571_v34  ;;  %v304_v5 = vsel %vm303_vm9, %v302_v26, %v297_v38 }
 0x132   :  { %v1450_v9 = vpop.eup %1449  ;;  %v736_v30 = vadd.f32 1.0, %v1448_v12  ;;  %v309_v47 = vrot.slane %v1842_v7, %v1859_v24  ;;  %v1100_v57 = vsel %vm303_vm9, %v1099_v27, %v1095_v41  ;;  %v1104_v19 = vrot.slane %v1848_v44, %v1859_v24 }
 0x133   :  { %v1452_v13 = vpop.eup %1451  ;;  %v595_v0 = vrot.slane %v1450_v9, %v1874_v17  ;;  %v316_v4 = vrot.slane %v1899_v49, %v1866_v10  ;;  %v581_v15 = vsel %vm310_vm10, %v580_v39, %v576_v60  ;;  %v838_v25 = vsel %vm303_vm9, %v837_v42, %v833_v59 }
 0x134   :  { %v1454_v40 = vpop.eup %1453  ;;  %1469 = vrcp.f32 %v736_v30  ;;  %v1109_v14 = vrot.slane %v1903_v22, %v1866_v10  ;;  %v323_v7 = vrot.slane %v1452_v13, %v1871_v50  ;;  %v586_v20 = vsel %vm317_vm11, %v585_v45, %v581_v15 }
 0x135   :  { %v1456_v21 = vpop.eup %1455  ;;  %v1114_v51 = vrot.slane %v1454_v40, %v1871_v50  ;;  %v591_v32 = vsel %vm324_vm12, %v590_v43, %v586_v20  ;;  %v842_v33 = vrot.slane %v1861_v28, %v1859_v24  ;;  %v311_v22 = vsel %vm310_vm10, %v309_v47, %v304_v5 }
 0x136   :  { %v1458_v35 = vpop.eup %1457  ;;  %v330_v44 = vrot.slane %v1456_v21, %v1874_v17  ;;  %v596_v53 = vsel %vm331_vm13, %v595_v0, %v591_v32  ;;  %v847_v37 = vrot.slane %v1916_v2, %v1866_v10  ;;  %v318_v56 = vsel %vm317_vm11, %v316_v4, %v311_v22 }
 0x137   :  { %v1460_v48 = vpop.eup %1459  ;;  %v1119_v46 = vrot.slane %v1458_v35, %v1874_v17  ;;  %v1105_v62 = vsel %vm310_vm10, %v1104_v19, %v1100_v57  ;;  %v325_v24 = vsel %vm324_vm12, %v323_v7, %v318_v56  ;;  %v843_v11 = vsel %vm310_vm10, %v842_v33, %v838_v25 }
 0x138   :  { %v1462_v29 = vpop.eup %1461  ;;  %v600_v49 = vrot.slane %v1460_v48, %v1879_v1  ;;  %v1110_v3 = vsel %vm317_vm11, %v1109_v14, %v1105_v62  ;;  %v332_v10 = vsel %vm331_vm13, %v330_v44, %v325_v24  ;;  %v848_v23 = vsel %vm317_vm11, %v847_v37, %v843_v11 }
 0x139   :  { %v1464_v52 = vpop.eup %1463  ;;  %v852_v58 = vrot.slane %v1462_v29, %v1871_v50  ;;  %v1115_v2 = vsel %vm324_vm12, %v1114_v51, %v1110_v3 }
 0x13a   :  { %v1466_v54 = vpop.eup %1465  ;;  %v601_v16 = vsel %vm338_vm14, %v600_v49, %v596_v53  ;;  %v857_v6 = vrot.slane %v1464_v52, %v1874_v17  ;;  %v1120_v50 = vsel %vm331_vm13, %v1119_v46, %v1115_v2 }
 0x13b   :  { %v1468_v63 = vpop.eup %1467  ;;  %v337_v28 = vrot.slane %v1466_v54, %v1879_v1  ;;  %603 = vst [vmem:[#allocation6 + $0x1] sm:$0x1] %v601_v16  ;;  %v853_v12 = vsel %vm324_vm12, %v852_v58, %v848_v23 }
 0x13c   :  { %v1124_v61 = vrot.slane %v1468_v63, %v1879_v1  ;;  %v858_v36 = vsel %vm331_vm13, %v857_v6, %v853_v12 }
 0x13d   :  { %v339_v31 = vsel %vm338_vm14, %v337_v28, %v332_v10 }
 0x13e   :  { %v1470_v8 = vpop.eup %1469  ;;  %341 = vst [vmem:[#allocation6] sm:$0x1] %v339_v31  ;;  %v1125_v17 = vsel %vm338_vm14, %v1124_v61, %v1120_v50 }
 0x13f   :  { %v862_v18 = vrot.slane %v1470_v8, %v1879_v1  ;;  %1127 = vst [vmem:[#allocation6 + $0x3] sm:$0x1] %v1125_v17 }
 0x141   :  { %v863_v26 = vsel %vm338_vm14, %v862_v18, %v858_v36 }
 0x142   :  { %865 = vst [vmem:[#allocation6 + $0x2] sm:$0x1] %v863_v26 }
 0x143   :  { %1504 = shalt.err (!%p1501_p12)
}
 0x144   :  { %s1505_s11 = scalar_lea.hbm %s2008_s3, 64 }
 0x145   :  { %p1506_p13 = scmp.ne.s32.totalorder %s2008_s3, %s1505_s11  ;;  %p1509_p0 = scmp.lt.u32.totalorder %s1505_s11, %s2008_s3 }
 0x147   :  { %p1511_p1 = pnand %p1509_p0, %p1506_p13 }
 0x149   :  { %1514 = shalt.err (!%p1511_p1)
}
 0x14a   :  { %1137 = dma.vmem_to_hbm [thread:$0]  %s1135_s7, 64, %s2008_s3, [#allocation5]  }
 0x14b   :  { %1517 = dma.done.wait [#allocation5], 64  }
 0x14c   :  { %1518 = vsyncadd [#allocation5], 4294967232 }
 0x14d   :  { %1141 = vsyncpa [#allocation4], 1 }
 0x14e   :  { %1142 = vsyncpa [#allocation5], 1 }

</bundles_post_ra>
